<compile_context>
chip_gen: v5e
topology: v5e:2x2
jax: 0.10.0
libtpu: 0.0.40
codegen_flags: <defaults>
</compile_context>

<pallas_src>
import functools
import math

import jax
import jax.numpy as jnp
from jax import lax
from jax.experimental import pallas as pl
from jax.experimental.pallas import tpu as pltpu


def _round_up(x, m):
    return ((x + m - 1) // m) * m


def _gelu_exact(x):
    # PyTorch F.gelu default (approximate='none'): 0.5*x*(1+erf(x/sqrt(2)))
    return 0.5 * x * (1.0 + lax.erf(x * (1.0 / math.sqrt(2.0))))


def softalign_kernel(t_ref, s_ref, wq_ref, bq_ref, wkv_ref, bkv_ref, o_ref,
                     q_sc, m_sc, l_sc, acc_sc, *, d_pad, ts_valid, kv_block,
                     mask_kv):
    Bb, Tq, Dt = t_ref.shape
    _, Tkv, Ds = s_ref.shape
    ki = pl.program_id(2)

    # --- first kv tile for this (batch, q-tile): project Q, reset flash state.
    @pl.when(ki == 0)
    def _():
        t2 = t_ref[...].reshape(Bb * Tq, Dt)
        # 1/sqrt(d_k) already folded into wq/bq in the wrapper.
        q = jnp.dot(t2, wq_ref[...],
                    preferred_element_type=jnp.float32) + bq_ref[...]
        q_sc[...] = q.reshape(Bb, Tq, d_pad).astype(jnp.bfloat16)
        m_sc[...] = jnp.full_like(m_sc, -jnp.inf)
        l_sc[...] = jnp.zeros_like(l_sc)
        acc_sc[...] = jnp.zeros_like(acc_sc)

    # --- every step: fused K|V projection for this key tile, then flash update.
    s2 = s_ref[...].reshape(Bb * Tkv, Ds)
    kv = jnp.dot(s2, wkv_ref[...],
                 preferred_element_type=jnp.float32) + bkv_ref[...]
    kv = _gelu_exact(kv).astype(jnp.bfloat16)      # early bf16: halves k/v temps
    k = kv[:, :d_pad].reshape(Bb, Tkv, d_pad)      # lane-aligned static slices
    v = kv[:, d_pad:].reshape(Bb, Tkv, d_pad)

    # TODO(synk): verify in the Mosaic lowering whether this A@B^T contraction
    # inserts a per-tile XLU transpose of k; if XLU saturates at large Ts,
    # transpose k once per block instead.
    scores = jnp.einsum("btd,bsd->bts", q_sc[...], k,
                        preferred_element_type=jnp.float32)
    if mask_kv:
        # Padded key rows are gelu(bias) (nonzero) -> mask their columns out.
        col = ki * kv_block + lax.broadcasted_iota(jnp.int32, scores.shape, 2)
        scores = jnp.where(col < ts_valid, scores, -1e30)

    m_new = jnp.maximum(m_sc[...], scores.max(axis=-1, keepdims=True))
    alpha = jnp.exp(m_sc[...] - m_new)
    p = jnp.exp(scores - m_new)                    # un-normalized probabilities
    l_sc[...] = alpha * l_sc[...] + p.sum(axis=-1, keepdims=True)
    acc_sc[...] = alpha * acc_sc[...] + jnp.einsum(
        "bts,bsd->btd", p.astype(jnp.bfloat16), v,
        preferred_element_type=jnp.float32)
    m_sc[...] = m_new

    # --- last kv tile: normalize after PV (Tq*Dp muls, not Tq*Ts), store output.
    @pl.when(ki == pl.num_programs(2) - 1)
    def _():
        o_ref[...] = (acc_sc[...] *
                      pl.reciprocal(l_sc[...], approx=True)).astype(o_ref.dtype)


def _vmem_estimate(bb, tq, tkv, dt, ds, dp, out_itemsize):
    """Rough live-VMEM bytes for one grid step (double-buffered IO + temps)."""
    w = 2 * ((dt * dp + ds * 2 * dp) * 2 + (dp + 2 * dp) * 4)      # weights x2
    t_blk = 2 * bb * tq * dt * 2
    s_blk = 2 * bb * tkv * ds * 2
    o_blk = 2 * bb * tq * dp * out_itemsize
    scratch = bb * tq * dp * (2 + 4) + 2 * bb * tq * 4             # q + acc + m/l
    temps = (bb * tkv * 2 * dp * (4 + 2)                           # kv f32 + bf16
             + 2 * bb * tq * tkv * 4                               # scores + p
             + bb * tq * dp * 4)                                   # pv partial
    return w + t_blk + s_blk + o_blk + scratch + temps


def _pick_tile(total, cap):
    """Largest multiple-of-16 divisor of `total` (a multiple of 16) <= cap."""
    if total <= cap:
        return total
    best, t = 16, 16
    while t <= cap:
        if total % t == 0:
            best = t
        t += 16
    return best


def _vmem_cap_bytes():
    try:
        cap = int(pltpu.get_tpu_info().vmem_capacity_bytes)
        return max(32 << 20, cap - (16 << 20))     # leave headroom
    except Exception:
        return 48 << 20                            # safe on v7x's 64 MiB


def softalign(teacher_feat, student_feat, params):
    """teacher_feat: (B, T_t, D_t), student_feat: (B, T_s, D_s)."""
    B, Tt, Dt = teacher_feat.shape
    _, Ts, Ds = student_feat.shape

    Dp = _round_up(Dt, 128)        # projection / output width (lane-dense)
    Ttp = _round_up(Tt, 16)        # sublane-aligned sequence dims (bf16)
    Tsp = _round_up(Ts, 16)
    out_itemsize = jnp.dtype(teacher_feat.dtype).itemsize

    # --- tile planning against a VMEM budget ------------------------------
    cap = _vmem_cap_bytes()
    budget = min(40 << 20, cap)
    tq = tkv = 16
    for cap_q, cap_kv in ((1024, 512), (512, 512), (512, 256), (256, 256),
                          (256, 128), (128, 128), (64, 64), (32, 32), (16, 16)):
        tq = _pick_tile(Ttp, cap_q)
        tkv = _pick_tile(Tsp, cap_kv)
        if _vmem_estimate(1, tq, tkv, Dt, Ds, Dp, out_itemsize) <= budget:
            break
    bb_fit = 1
    while _vmem_estimate(bb_fit * 2, tq, tkv, Dt, Ds, Dp, out_itemsize) <= budget:
        bb_fit *= 2
    # Keep the batch grid axis >= 2 steps when B allows it (v7x megacore), and
    # pick Bb dividing B so no padded batch rows burn MXU/EUP work.
    bb_cap = max(1, min(bb_fit, B if B == 1 else (B + 1) // 2))
    Bb = 1
    for cand in range(min(bb_cap, B), 0, -1):
        if B % cand == 0:
            Bb = cand
            break

    est = _vmem_estimate(Bb, tq, tkv, Dt, Ds, Dp, out_itemsize)
    vmem_limit = int(min(cap, max(32 << 20, 2 * est)))

    # --- operand preparation ----------------------------------------------
    scale = 1.0 / math.sqrt(float(Dt))   # d_k = teacher feature dim

    # Activations keep their true feature dims (no 4x pad traffic for small D);
    # only the sequence dims are padded (zeros) and cast to bf16 MXU operands.
    t = jnp.pad(teacher_feat, ((0, 0), (0, Ttp - Tt), (0, 0))).astype(jnp.bfloat16)
    s = jnp.pad(student_feat, ((0, 0), (0, Tsp - Ts), (0, 0))).astype(jnp.bfloat16)

    # Weights: pad only the OUTPUT dim to Dp (padded q/k/v feature columns are
    # exactly zero since padded weight columns/biases are zero and gelu(0)=0).
    # 1/sqrt(d_k) folded into wq/bq here (fuses into the pad/cast, free).
    # NOTE(v6e/v7x): Dp=128-wide matmul dims half-fill the 256-wide MXU; the
    # fused 2*Dp KV projection is already 256-wide.
    wq = jnp.pad(params["wq"] * scale, ((0, 0), (0, Dp - Dt))).astype(jnp.bfloat16)
    bq = jnp.pad(params["bq"] * scale, ((0, 0), (0, Dp - Dt))).astype(jnp.float32)
    wk = jnp.pad(params["wk"], ((0, 0), (0, Dp - Dt)))
    wv = jnp.pad(params["wv"], ((0, 0), (0, Dp - Dt)))
    wkv = jnp.concatenate([wk, wv], axis=1).astype(jnp.bfloat16)     # (Ds, 2*Dp)
    bk = jnp.pad(params["bk"], ((0, 0), (0, Dp - Dt)))
    bv = jnp.pad(params["bv"], ((0, 0), (0, Dp - Dt)))
    bkv = jnp.concatenate([bk, bv], axis=1).astype(jnp.float32)      # (1, 2*Dp)

    grid = (B // Bb, Ttp // tq, Tsp // tkv)
    n_q_tiles = Ttp // tq

    kernel = functools.partial(
        softalign_kernel, d_pad=Dp, ts_valid=Ts, kv_block=tkv,
        mask_kv=(Tsp != Ts))

    flops = 2 * B * (Ttp * Dt * Dp + n_q_tiles * Tsp * Ds * 2 * Dp
                     + 2 * Ttp * Tsp * Dp)
    transcendentals = B * (Ttp * Tsp + n_q_tiles * Tsp * 2 * Dp)
    bytes_accessed = (t.size * 2 + s.size * 2 * n_q_tiles
                      + B * Ttp * Dp * out_itemsize
                      + wq.size * 2 + wkv.size * 2 + bq.size * 4 + bkv.size * 4)

    out = pl.pallas_call(
        kernel,
        out_shape=jax.ShapeDtypeStruct((B, Ttp, Dp), teacher_feat.dtype),
        grid_spec=pltpu.PrefetchScalarGridSpec(
            num_scalar_prefetch=0,
            grid=grid,
            in_specs=[
                pl.BlockSpec((Bb, tq, Dt), lambda b, qi, ki: (b, qi, 0)),
                # TODO(synk): sweep pipeline_mode=pl.Buffered(3) here on
                # v5e/v6e if this DMA shows exposed in the trace.
                pl.BlockSpec((Bb, tkv, Ds), lambda b, qi, ki: (b, ki, 0)),
                # Weights/biases: constant block index across the grid
                # (DMA'd once, stay resident).
                pl.BlockSpec((Dt, Dp), lambda b, qi, ki: (0, 0)),
                pl.BlockSpec((1, Dp), lambda b, qi, ki: (0, 0)),
                pl.BlockSpec((Ds, 2 * Dp), lambda b, qi, ki: (0, 0)),
                pl.BlockSpec((1, 2 * Dp), lambda b, qi, ki: (0, 0)),
            ],
            out_specs=pl.BlockSpec((Bb, tq, Dp), lambda b, qi, ki: (b, qi, 0)),
            scratch_shapes=[
                pltpu.VMEM((Bb, tq, Dp), jnp.bfloat16),   # projected Q
                pltpu.VMEM((Bb, tq, 1), jnp.float32),     # running max
                pltpu.VMEM((Bb, tq, 1), jnp.float32),     # running denom
                pltpu.VMEM((Bb, tq, Dp), jnp.float32),    # output accumulator
            ],
        ),
        compiler_params=pltpu.CompilerParams(
            dimension_semantics=("parallel", "parallel", "arbitrary"),
            vmem_limit_bytes=vmem_limit),
        cost_estimate=pl.CostEstimate(
            flops=int(flops), transcendentals=int(transcendentals),
            bytes_accessed=int(bytes_accessed)),
    )(t, s, wq, bq, wkv, bkv)

    return out[:, :Tt, :Dt]


def init_params(key, student_dim, teacher_dim):
    """Deterministic synthetic init mimicking nn.Linear's U(-1/sqrt(in), 1/sqrt(in))."""
    ks = jax.random.split(key, 6)

    def lin(kw, kb, in_dim, out_dim):
        bound = 1.0 / math.sqrt(in_dim)
        # stored as (in, out) so kernel computes x @ W + b
        w = jax.random.uniform(kw, (in_dim, out_dim), jnp.float32, -bound, bound)
        b = jax.random.uniform(kb, (1, out_dim), jnp.float32, -bound, bound)
        return w, b

    wq, bq = lin(ks[0], ks[1], teacher_dim, teacher_dim)
    wk, bk = lin(ks[2], ks[3], student_dim, teacher_dim)
    wv, bv = lin(ks[4], ks[5], student_dim, teacher_dim)
    return {"wq": wq, "bq": bq, "wk": wk, "bk": bk, "wv": wv, "bv": bv}


def softalign_ref(teacher_feat, student_feat, params):
    """Pure-JAX f32 reference matching the PyTorch forward."""
    q = teacher_feat @ params["wq"] + params["bq"]
    k = jax.nn.gelu(student_feat @ params["wk"] + params["bk"], approximate=False)
    v = jax.nn.gelu(student_feat @ params["wv"] + params["bv"], approximate=False)
    d_k = teacher_feat.shape[-1]
    scores = jnp.einsum("btd,bsd->bts", q, k) / math.sqrt(d_k)
    attn = jax.nn.softmax(scores, axis=-1)
    return jnp.einsum("bts,bsd->btd", attn, v)


if __name__ == "__main__":
    B, Tt, Ts = 2, 8, 8
    student_dim, teacher_dim = 32, 32

    key = jax.random.PRNGKey(0)
    k_t, k_s, k_p = jax.random.split(key, 3)
    teacher_feat = jax.random.normal(k_t, (B, Tt, teacher_dim), jnp.float32)
    student_feat = jax.random.normal(k_s, (B, Ts, student_dim), jnp.float32)
    params = init_params(k_p, student_dim, teacher_dim)

    out = softalign(teacher_feat, student_feat, params)
    out = jax.block_until_ready(out)

    ref = softalign_ref(teacher_feat, student_feat, params)
    assert out.shape == (B, Tt, teacher_dim)
    # bf16 MXU operands (f32 accumulation) + approx reciprocal -> relaxed
    # tolerance vs. the pure-f32 reference.
    assert jnp.allclose(out, ref, atol=2e-2, rtol=2e-2), "mismatch vs reference"

    print("KERNEL_OK")
</pallas_src>

<mosaic_0001>
module attributes {stable_mosaic.version = 11 : i64} {
  func.func @softalign_kernel(%arg0: i32, %arg1: i32, %arg2: i32, %arg3: memref<1x16x32xbf16, #tpu.memory_space<vmem>>, %arg4: memref<1x16x32xbf16, #tpu.memory_space<vmem>>, %arg5: memref<32x128xbf16, #tpu.memory_space<vmem>>, %arg6: memref<1x128xf32, #tpu.memory_space<vmem>>, %arg7: memref<32x256xbf16, #tpu.memory_space<vmem>>, %arg8: memref<1x256xf32, #tpu.memory_space<vmem>>, %arg9: memref<1x16x128xf32, #tpu.memory_space<vmem>>, %arg10: memref<1x16x128xbf16, #tpu.memory_space<vmem>>, %arg11: memref<1x16x1xf32, #tpu.memory_space<vmem>>, %arg12: memref<1x16x1xf32, #tpu.memory_space<vmem>>, %arg13: memref<1x16x128xf32, #tpu.memory_space<vmem>>) attributes {dimension_semantics = [#tpu.dimension_semantics<parallel>, #tpu.dimension_semantics<parallel>, #tpu.dimension_semantics<arbitrary>], iteration_bounds = array<i64: 2, 1, 1>, scalar_prefetch = 0 : i64, scratch_operands = 4 : i64, tpu.core_type = #tpu.core_type<tc>, window_params = [{transform_indices = @transform_0, window_bounds = array<i64: 1, 16, 32>}, {transform_indices = @transform_1, window_bounds = array<i64: 1, 16, 32>}, {pipeline_mode = #tpu.pipeline_mode<synchronous>, transform_indices = @transform_2, window_bounds = array<i64: 32, 128>}, {pipeline_mode = #tpu.pipeline_mode<synchronous>, transform_indices = @transform_3, window_bounds = array<i64: 1, 128>}, {pipeline_mode = #tpu.pipeline_mode<synchronous>, transform_indices = @transform_4, window_bounds = array<i64: 32, 256>}, {pipeline_mode = #tpu.pipeline_mode<synchronous>, transform_indices = @transform_5, window_bounds = array<i64: 1, 256>}, {transform_indices = @transform_6, window_bounds = array<i64: 1, 16, 128>}]} {
    %c0_i32 = arith.constant 0 : i32
    %0 = arith.cmpi eq, %arg2, %c0_i32 : i32
    %1 = arith.extui %0 : i1 to i32
    %c0_i32_0 = arith.constant 0 : i32
    %2 = arith.cmpi ne, %1, %c0_i32_0 : i32
    scf.if %2 {
      %c0_41 = arith.constant 0 : index
      %c0_42 = arith.constant 0 : index
      %c0_43 = arith.constant 0 : index
      %60 = vector.load %arg3[%c0_41, %c0_42, %c0_43] : memref<1x16x32xbf16, #tpu.memory_space<vmem>>, vector<1x16x32xbf16>
      %61 = vector.shape_cast %60 : vector<1x16x32xbf16> to vector<16x32xbf16>
      %c0_44 = arith.constant 0 : index
      %c0_45 = arith.constant 0 : index
      %62 = vector.load %arg5[%c0_44, %c0_45] : memref<32x128xbf16, #tpu.memory_space<vmem>>, vector<32x128xbf16>
      %cst_46 = arith.constant dense<0.000000e+00> : vector<16x128xf32>
      %63 = tpu.matmul %61, %62, %cst_46 {dimension_numbers = #tpu.dot_dimension_numbers<[1], [0], [0], [1], [0, 0, 1, 1], [], []>} : vector<16x32xbf16>, vector<32x128xbf16>, vector<16x128xf32> -> vector<16x128xf32>
      %c0_47 = arith.constant 0 : index
      %c0_48 = arith.constant 0 : index
      %64 = vector.load %arg6[%c0_47, %c0_48] : memref<1x128xf32, #tpu.memory_space<vmem>>, vector<1x128xf32>
      %65 = vector.broadcast %64 : vector<1x128xf32> to vector<16x128xf32>
      %66 = arith.addf %63, %65 : vector<16x128xf32>
      %67 = vector.shape_cast %66 : vector<16x128xf32> to vector<1x16x128xf32>
      %68 = arith.truncf %67 : vector<1x16x128xf32> to vector<1x16x128xbf16>
      %c0_49 = arith.constant 0 : index
      %c0_50 = arith.constant 0 : index
      %c0_51 = arith.constant 0 : index
      %69 = vector.load %arg10[%c0_49, %c0_50, %c0_51] : memref<1x16x128xbf16, #tpu.memory_space<vmem>>, vector<1x16x128xbf16>
      tpu.vector_store %arg10[%c0_49, %c0_50, %c0_51], %68 {strides = array<i32>} : memref<1x16x128xbf16, #tpu.memory_space<vmem>>, vector<1x16x128xbf16>,
      %cst_52 = arith.constant 0xFF800000 : f32
      %70 = vector.broadcast %cst_52 : f32 to vector<1x16x1xf32>
      %c0_53 = arith.constant 0 : index
      %c0_54 = arith.constant 0 : index
      %c0_55 = arith.constant 0 : index
      %71 = vector.load %arg11[%c0_53, %c0_54, %c0_55] : memref<1x16x1xf32, #tpu.memory_space<vmem>>, vector<1x16x1xf32>
      tpu.vector_store %arg11[%c0_53, %c0_54, %c0_55], %70 {strides = array<i32>} : memref<1x16x1xf32, #tpu.memory_space<vmem>>, vector<1x16x1xf32>,
      %cst_56 = arith.constant 0.000000e+00 : f32
      %72 = vector.broadcast %cst_56 : f32 to vector<1x16x1xf32>
      %c0_57 = arith.constant 0 : index
      %c0_58 = arith.constant 0 : index
      %c0_59 = arith.constant 0 : index
      %73 = vector.load %arg12[%c0_57, %c0_58, %c0_59] : memref<1x16x1xf32, #tpu.memory_space<vmem>>, vector<1x16x1xf32>
      tpu.vector_store %arg12[%c0_57, %c0_58, %c0_59], %72 {strides = array<i32>} : memref<1x16x1xf32, #tpu.memory_space<vmem>>, vector<1x16x1xf32>,
      %cst_60 = arith.constant 0.000000e+00 : f32
      %74 = vector.broadcast %cst_60 : f32 to vector<1x16x128xf32>
      %c0_61 = arith.constant 0 : index
      %c0_62 = arith.constant 0 : index
      %c0_63 = arith.constant 0 : index
      %75 = vector.load %arg13[%c0_61, %c0_62, %c0_63] : memref<1x16x128xf32, #tpu.memory_space<vmem>>, vector<1x16x128xf32>
      tpu.vector_store %arg13[%c0_61, %c0_62, %c0_63], %74 {strides = array<i32>} : memref<1x16x128xf32, #tpu.memory_space<vmem>>, vector<1x16x128xf32>,
    } else {
    }
    %c0 = arith.constant 0 : index
    %c0_1 = arith.constant 0 : index
    %c0_2 = arith.constant 0 : index
    %3 = vector.load %arg4[%c0, %c0_1, %c0_2] : memref<1x16x32xbf16, #tpu.memory_space<vmem>>, vector<1x16x32xbf16>
    %4 = vector.shape_cast %3 : vector<1x16x32xbf16> to vector<16x32xbf16>
    %c0_3 = arith.constant 0 : index
    %c0_4 = arith.constant 0 : index
    %5 = vector.load %arg7[%c0_3, %c0_4] : memref<32x256xbf16, #tpu.memory_space<vmem>>, vector<32x256xbf16>
    %cst = arith.constant dense<0.000000e+00> : vector<16x256xf32>
    %6 = tpu.matmul %4, %5, %cst {dimension_numbers = #tpu.dot_dimension_numbers<[1], [0], [0], [1], [0, 0, 1, 1], [], []>} : vector<16x32xbf16>, vector<32x256xbf16>, vector<16x256xf32> -> vector<16x256xf32>
    %c0_5 = arith.constant 0 : index
    %c0_6 = arith.constant 0 : index
    %7 = vector.load %arg8[%c0_5, %c0_6] : memref<1x256xf32, #tpu.memory_space<vmem>>, vector<1x256xf32>
    %8 = vector.broadcast %7 : vector<1x256xf32> to vector<16x256xf32>
    %9 = arith.addf %6, %8 : vector<16x256xf32>
    %cst_7 = arith.constant 5.000000e-01 : f32
    %10 = vector.broadcast %cst_7 : f32 to vector<16x256xf32>
    %11 = arith.mulf %10, %9 : vector<16x256xf32>
    %cst_8 = arith.constant 0.707106769 : f32
    %12 = vector.broadcast %cst_8 : f32 to vector<16x256xf32>
    %13 = arith.mulf %9, %12 : vector<16x256xf32>
    %14 = math.erf %13 : vector<16x256xf32>
    %cst_9 = arith.constant 1.000000e+00 : f32
    %15 = vector.broadcast %cst_9 : f32 to vector<16x256xf32>
    %16 = arith.addf %15, %14 : vector<16x256xf32>
    %17 = arith.mulf %11, %16 : vector<16x256xf32>
    %18 = arith.truncf %17 : vector<16x256xf32> to vector<16x256xbf16>
    %19 = vector.extract_strided_slice %18 {offsets = [0, 0], sizes = [16, 128], strides = [1, 1]} : vector<16x256xbf16> to vector<16x128xbf16>
    %20 = vector.shape_cast %19 : vector<16x128xbf16> to vector<1x16x128xbf16>
    %21 = vector.extract_strided_slice %18 {offsets = [0, 128], sizes = [16, 128], strides = [1, 1]} : vector<16x256xbf16> to vector<16x128xbf16>
    %22 = vector.shape_cast %21 : vector<16x128xbf16> to vector<1x16x128xbf16>
    %c0_10 = arith.constant 0 : index
    %c0_11 = arith.constant 0 : index
    %c0_12 = arith.constant 0 : index
    %23 = vector.load %arg10[%c0_10, %c0_11, %c0_12] : memref<1x16x128xbf16, #tpu.memory_space<vmem>>, vector<1x16x128xbf16>
    "tpu.trace_start"() <{level = 10 : i32, message = "btd,bsd->bts"}> : () -> ()
    %cst_13 = arith.constant dense<0.000000e+00> : vector<1x16x16xf32>
    %24 = tpu.matmul %23, %20, %cst_13 {dimension_numbers = #tpu.dot_dimension_numbers<[2], [2], [1], [1], [0, 0, 0, 1, 1, 1], [0], [0]>} : vector<1x16x128xbf16>, vector<1x16x128xbf16>, vector<1x16x16xf32> -> vector<1x16x16xf32>
    "tpu.trace_stop"() : () -> ()
    %c16_i32 = arith.constant 16 : i32
    %25 = arith.muli %arg2, %c16_i32 : i32
    %26 = tpu.iota {dimensions = array<i32: 2>} : vector<1x16x16xi32>
    %27 = vector.broadcast %25 : i32 to vector<1x16x16xi32>
    %28 = arith.addi %27, %26 : vector<1x16x16xi32>
    %c8_i32 = arith.constant 8 : i32
    %29 = vector.broadcast %c8_i32 : i32 to vector<1x16x16xi32>
    %30 = arith.cmpi slt, %28, %29 : vector<1x16x16xi32>
    %cst_14 = arith.constant -1.000000e+30 : f32
    %31 = vector.broadcast %cst_14 : f32 to vector<1x16x16xf32>
    %32 = arith.select %30, %24, %31 : vector<1x16x16xi1>, vector<1x16x16xf32>
    %c0_15 = arith.constant 0 : index
    %c0_16 = arith.constant 0 : index
    %c0_17 = arith.constant 0 : index
    %33 = vector.load %arg11[%c0_15, %c0_16, %c0_17] : memref<1x16x1xf32, #tpu.memory_space<vmem>>, vector<1x16x1xf32>
    %cst_18 = arith.constant dense<0xFF800000> : vector<1x16xf32>
    %34 = vector.multi_reduction <maximumf>, %32, %cst_18 [2] : vector<1x16x16xf32> to vector<1x16xf32>
    %35 = vector.shape_cast %34 : vector<1x16xf32> to vector<1x16x1xf32>
    %36 = arith.maximumf %33, %35 : vector<1x16x1xf32>
    %c0_19 = arith.constant 0 : index
    %c0_20 = arith.constant 0 : index
    %c0_21 = arith.constant 0 : index
    %37 = vector.load %arg11[%c0_19, %c0_20, %c0_21] : memref<1x16x1xf32, #tpu.memory_space<vmem>>, vector<1x16x1xf32>
    %38 = arith.subf %37, %36 : vector<1x16x1xf32>
    %39 = math.exp %38 : vector<1x16x1xf32>
    %40 = vector.broadcast %36 : vector<1x16x1xf32> to vector<1x16x16xf32>
    %41 = arith.subf %32, %40 : vector<1x16x16xf32>
    %42 = math.exp %41 : vector<1x16x16xf32>
    %c0_22 = arith.constant 0 : index
    %c0_23 = arith.constant 0 : index
    %c0_24 = arith.constant 0 : index
    %43 = vector.load %arg12[%c0_22, %c0_23, %c0_24] : memref<1x16x1xf32, #tpu.memory_space<vmem>>, vector<1x16x1xf32>
    %44 = arith.mulf %39, %43 : vector<1x16x1xf32>
    %cst_25 = arith.constant dense<0.000000e+00> : vector<1x16xf32>
    %45 = vector.multi_reduction <add>, %42, %cst_25 [2] : vector<1x16x16xf32> to vector<1x16xf32>
    %46 = vector.shape_cast %45 : vector<1x16xf32> to vector<1x16x1xf32>
    %47 = arith.addf %44, %46 : vector<1x16x1xf32>
    %c0_26 = arith.constant 0 : index
    %c0_27 = arith.constant 0 : index
    %c0_28 = arith.constant 0 : index
    %48 = vector.load %arg12[%c0_26, %c0_27, %c0_28] : memref<1x16x1xf32, #tpu.memory_space<vmem>>, vector<1x16x1xf32>
    tpu.vector_store %arg12[%c0_26, %c0_27, %c0_28], %47 {strides = array<i32>} : memref<1x16x1xf32, #tpu.memory_space<vmem>>, vector<1x16x1xf32>,
    %c0_29 = arith.constant 0 : index
    %c0_30 = arith.constant 0 : index
    %c0_31 = arith.constant 0 : index
    %49 = vector.load %arg13[%c0_29, %c0_30, %c0_31] : memref<1x16x128xf32, #tpu.memory_space<vmem>>, vector<1x16x128xf32>
    %50 = vector.broadcast %39 : vector<1x16x1xf32> to vector<1x16x128xf32>
    %51 = arith.mulf %50, %49 : vector<1x16x128xf32>
    %52 = arith.truncf %42 : vector<1x16x16xf32> to vector<1x16x16xbf16>
    "tpu.trace_start"() <{level = 10 : i32, message = "bts,bsd->btd"}> : () -> ()
    %cst_32 = arith.constant dense<0.000000e+00> : vector<1x16x128xf32>
    %53 = tpu.matmul %52, %22, %cst_32 {dimension_numbers = #tpu.dot_dimension_numbers<[2], [1], [1], [2], [0, 0, 0, 1, 1, 2], [0], [0]>} : vector<1x16x16xbf16>, vector<1x16x128xbf16>, vector<1x16x128xf32> -> vector<1x16x128xf32>
    "tpu.trace_stop"() : () -> ()
    %54 = arith.addf %51, %53 : vector<1x16x128xf32>
    %c0_33 = arith.constant 0 : index
    %c0_34 = arith.constant 0 : index
    %c0_35 = arith.constant 0 : index
    %55 = vector.load %arg13[%c0_33, %c0_34, %c0_35] : memref<1x16x128xf32, #tpu.memory_space<vmem>>, vector<1x16x128xf32>
    tpu.vector_store %arg13[%c0_33, %c0_34, %c0_35], %54 {strides = array<i32>} : memref<1x16x128xf32, #tpu.memory_space<vmem>>, vector<1x16x128xf32>,
    %c0_36 = arith.constant 0 : index
    %c0_37 = arith.constant 0 : index
    %c0_38 = arith.constant 0 : index
    %56 = vector.load %arg11[%c0_36, %c0_37, %c0_38] : memref<1x16x1xf32, #tpu.memory_space<vmem>>, vector<1x16x1xf32>
    tpu.vector_store %arg11[%c0_36, %c0_37, %c0_38], %36 {strides = array<i32>} : memref<1x16x1xf32, #tpu.memory_space<vmem>>, vector<1x16x1xf32>,
    %c0_i32_39 = arith.constant 0 : i32
    %57 = arith.cmpi eq, %arg2, %c0_i32_39 : i32
    %58 = arith.extui %57 : i1 to i32
    %c0_i32_40 = arith.constant 0 : i32
    %59 = arith.cmpi ne, %58, %c0_i32_40 : i32
    scf.if %59 {
      %c0_41 = arith.constant 0 : index
      %c0_42 = arith.constant 0 : index
      %c0_43 = arith.constant 0 : index
      %60 = vector.load %arg13[%c0_41, %c0_42, %c0_43] : memref<1x16x128xf32, #tpu.memory_space<vmem>>, vector<1x16x128xf32>
      %c0_44 = arith.constant 0 : index
      %c0_45 = arith.constant 0 : index
      %c0_46 = arith.constant 0 : index
      %61 = vector.load %arg12[%c0_44, %c0_45, %c0_46] : memref<1x16x1xf32, #tpu.memory_space<vmem>>, vector<1x16x1xf32>
      %62 = tpu.reciprocal %61 {approx = true} : vector<1x16x1xf32> -> vector<1x16x1xf32>
      %63 = vector.broadcast %62 : vector<1x16x1xf32> to vector<1x16x128xf32>
      %64 = arith.mulf %60, %63 : vector<1x16x128xf32>
      %c0_47 = arith.constant 0 : index
      %c0_48 = arith.constant 0 : index
      %c0_49 = arith.constant 0 : index
      %65 = vector.load %arg9[%c0_47, %c0_48, %c0_49] : memref<1x16x128xf32, #tpu.memory_space<vmem>>, vector<1x16x128xf32>
      tpu.vector_store %arg9[%c0_47, %c0_48, %c0_49], %64 {strides = array<i32>} : memref<1x16x128xf32, #tpu.memory_space<vmem>>, vector<1x16x128xf32>,
    } else {
    }
    return
  }
  func.func @transform_0(%arg0: i32, %arg1: i32, %arg2: i32) -> (i32, i32, i32) {
    %c0_i32 = arith.constant 0 : i32
    %c0_i32_0 = arith.constant 0 : i32
    return %arg0, %arg1, %c0_i32 : i32, i32, i32
  }
  func.func @transform_1(%arg0: i32, %arg1: i32, %arg2: i32) -> (i32, i32, i32) {
    %c0_i32 = arith.constant 0 : i32
    %c0_i32_0 = arith.constant 0 : i32
    return %arg0, %arg2, %c0_i32 : i32, i32, i32
  }
  func.func @transform_2(%arg0: i32, %arg1: i32, %arg2: i32) -> (i32, i32) {
    %c0_i32 = arith.constant 0 : i32
    %c0_i32_0 = arith.constant 0 : i32
    %c0_i32_1 = arith.constant 0 : i32
    return %c0_i32, %c0_i32_0 : i32, i32
  }
  func.func @transform_3(%arg0: i32, %arg1: i32, %arg2: i32) -> (i32, i32) {
    %c0_i32 = arith.constant 0 : i32
    %c0_i32_0 = arith.constant 0 : i32
    %c0_i32_1 = arith.constant 0 : i32
    return %c0_i32, %c0_i32_0 : i32, i32
  }
  func.func @transform_4(%arg0: i32, %arg1: i32, %arg2: i32) -> (i32, i32) {
    %c0_i32 = arith.constant 0 : i32
    %c0_i32_0 = arith.constant 0 : i32
    %c0_i32_1 = arith.constant 0 : i32
    return %c0_i32, %c0_i32_0 : i32, i32
  }
  func.func @transform_5(%arg0: i32, %arg1: i32, %arg2: i32) -> (i32, i32) {
    %c0_i32 = arith.constant 0 : i32
    %c0_i32_0 = arith.constant 0 : i32
    %c0_i32_1 = arith.constant 0 : i32
    return %c0_i32, %c0_i32_0 : i32, i32
  }
  func.func @transform_6(%arg0: i32, %arg1: i32, %arg2: i32) -> (i32, i32, i32) {
    %c0_i32 = arith.constant 0 : i32
    %c0_i32_0 = arith.constant 0 : i32
    return %arg0, %arg1, %c0_i32 : i32, i32, i32
  }
}

</mosaic_0001>

<bundles_post_ra>
// kernel: tpu_custom_call.1
= control target key start
LH: loop header
LB: loop body
LE: loop exit
PB: predicated region body
PF: predicated region fallthrough
CT: control target
= control target key end

     0   :  { %s1783_s0 = inlined_call_operand.hbm [shape: bf16[2,16,32], index: 0, kind: input, shape index: {}]   ;;  %s1784_s1 = inlined_call_operand.hbm [shape: bf16[2,16,32], index: 1, kind: input, shape index: {}]   ;;  %s1785_s2 = inlined_call_operand.hbm [shape: bf16[32,128], index: 2, kind: input, shape index: {}]   ;;  %s1786_s3 = inlined_call_operand.vmem [shape: f32[1,128], index: 3, kind: input, shape index: {}]   ;;  %s1787_s4 = inlined_call_operand.hbm [shape: bf16[32,256], index: 4, kind: input, shape index: {}]   ;;  %s1788_s5 = inlined_call_operand.vmem [shape: f32[1,256], index: 5, kind: input, shape index: {}]   ;;  %s1789_s6 = inlined_call_operand.hbm [shape: f32[2,16,128], index: 6, kind: output, shape index: {}]  }
   0x1   :  { %1798 = sst [smem:[#allocation25_spill]] %s1785_s2 }
   0x2   :  { %1799 = sst [smem:[#allocation26_spill]] %s1787_s4 }
   0x3   :  { %11 = vsyncpa [#allocation7], 0 }
   0x4   :  { %13 = vsyncpa [#allocation7 + $0x1], 0 }
   0x5   :  { %14 = vsyncpa [#allocation10], 0 }
   0x6   :  { %16 = vsyncpa [#allocation10 + $0x1], 0 }
   0x7   :  { %17 = vsyncpa [#allocation13], 0 }
   0x8   :  { %18 = vsyncpa [#allocation8], 0 }
   0x9   :  { %20 = vsyncpa [#allocation8 + $0x1], 0  ;;  %s1464_s21 = smov 0   ;;  %s1466_s22 = smov 0  }
   0xa   :  { %s1468_s23 = smov 0   ;;  %s1470_s24 = smov 0  }
   0xb   :  { %s1472_s25 = smov 0   ;;  %s1474_s26 = smov 0  }
   0xc LB: > { %1800 = sst [smem:[#allocation20_spill]] %s1404_s23  ;;  %s1495_s27 = sadd.s32 4294967295, %s1416_s26   ;;  %s1416_s26 = sphi %s1474_s26, %s26_s26   ;;  %s1412_s25 = sphi %s1472_s25, %s1822_s25   ;;  %s1408_s24 = sphi %s1470_s24, %s1821_s24   ;;  %s1404_s23 = sphi %s1468_s23, %s1820_s23   ;;  %s1400_s22 = sphi %s1466_s22, %s1824_s22   ;;  %s1396_s21 = sphi %s1464_s21, %s1823_s21  }
   0xd   : > { %1801 = sst [smem:[#allocation21_spill]] %s1412_s25  ;;  %s998_s28 = sadd.s32 4294967294, %s1416_s26  }
   0xe   : > { %p67_p0 = scmp.ne.s32.totalorder %s1400_s22, %s1396_s21  ;;  %p68_p1 = scmp.eq.s32.totalorder %s1495_s27, 0 }
   0xf   : > { %p205_p2 = scmp.eq.s32.totalorder %s1495_s27, 1  ;;  %p211_p3 = scmp.eq.s32.totalorder %s998_s28, 1 }
  0x10   : > { %p1504_p4 = por %p68_p1, %p67_p0  ;;  %p999_p5 = scmp.ge.s32.totalorder %s1416_s26, 1 }
  0x11   : > { %p1509_p6 = por %p211_p3, %p67_p0  ;;  %p218_p7 = scmp.lt.s32.totalorder %s1416_s26, 3 }
  0x12   : > { %s1805_s2 = sld [smem:[#allocation25_spill]]  ;;  %s1418_s11 = smov [#allocation11]  }
  0x13   : > { %s1803_s30 = scalar_select %p1509_p6, 1, 0 }
  0x14   : > { %p1517_p8 = pnand %p999_p5, %p218_p7  ;;  %s231_s12 = sshll.u32 %s1418_s11, 4  ;;  %s232_s12 = int_to_ptr.vmem [resolvable:$true] %s231_s12 }
  0x15   : > { %1804 = sst [smem:[#allocation22_spill]] %s1803_s30  ;;  %p1002_p11 = scmp.ge.s32.totalorder %s1416_s26, 2 }
  0x16   : > { %p1095_p9 = pneg %p1517_p8  ;;  %s1807_s4 = sld [smem:[#allocation26_spill]] }
  0x17   : > { %s1790_s16 = smov 64   ;;  %s1792_s17 = smov 4  }
  0x18   : > { %s229_s9 = sshll.u32 %s1805_s2, 4  ;;  %p1096_p10 = pnand %p1095_p9, %p68_p1  ;;  %s230_s9 = int_to_ptr.hbm [resolvable:$true] %s229_s9 }
  0x19   : > { %s1421_s18 = smov [#allocation12]   ;;  %s1422_s20 = smov 128  }
  0x1a   : > { %1098 = dma.hbm_to_vmem [thread:$0]  (!%p1096_p10), %s230_s9, 256, %s232_s12, [#allocation10], %s1790_s16, %s1790_s16, %s1792_s17  }
  0x1b   : > { %s248_s19 = sshll.u32 %s1421_s18, 4  ;;  %s1423_s28 = smov 8   ;;  %s249_s19 = int_to_ptr.vmem [resolvable:$true] %s248_s19 }
  0x1c   : > { %s246_s15 = sshll.u32 %s1807_s4, 4  ;;  %s45_s7 = sadd.s32 1, %s1412_s25  ;;  %s247_s15 = int_to_ptr.hbm [resolvable:$true] %s246_s15 }
  0x1d   : > { %1101 = dma.hbm_to_vmem [thread:$0]  (!%p1096_p10), %s247_s15, 512, %s249_s19, [#allocation13], %s1422_s20, %s1422_s20, %s1423_s28  }
  0x1e   : > { %s54_s8 = sadd.s32 1, %s1404_s23  ;;  %p47_p12 = scmp.ge.s32.totalorder %s45_s7, 2 }
  0x1f   : > { %p61_p13 = scmp.ne.s32.totalorder %s1404_s23, %s1400_s22  ;;  %p62_p0 = scmp.eq.s32.totalorder %s1416_s26, 0 }
  0x20   : > { %p1115_p3 = scmp.lt.s32.totalorder %s1416_s26, 2  ;;  %s1826_s7 = smov (%p47_p12, %s45_s7), 0 }
  0x21   : > { %1808 = sst [smem:[#allocation23_spill]] %s1826_s7  ;;  %p1540_p5 = por %p62_p0, %p61_p13 }
  0x22   : > { %p1546_p7 = por %p205_p2, %p61_p13  ;;  %s49_s12 = ssub.s32 %s1412_s25, %s1826_s7 }
  0x23   : > { %s265_s13 = sand.u32 1, %s1404_s23   ;;  %p52_p9 = scmp.eq.s32.totalorder %s49_s12, 0 }
  0x24   : > { %s1003_s14 = sshll.u32 %s265_s13, 3  ;;  %s1064_s15 = sshll.u32 %s1412_s25, 3 }
  0x25   : > { %s1555_s18 = scalar_select %p52_p9, %s1404_s23, %s54_s8  }
  0x26   : > { %s276_s28 = scalar_lea.hbm %s1783_s0, %s1064_s15  ;;  %s269_s17 = scalar_lea.vmem [#allocation6], %s1003_s14 }
  0x27   : > { %1811 = sst [smem:[#allocation24_spill]] %s1555_s18  ;;  %s277_s16 = sshll.u32 %s276_s28, 4  ;;  %s278_s16 = int_to_ptr.hbm [resolvable:$true] %s277_s16 }
  0x28   : > { %s279_s2 = sshll.u32 %s269_s17, 4  ;;  %p1103_p2 = pnand %p1115_p3, %p1540_p5  ;;  %s280_s2 = int_to_ptr.vmem [resolvable:$true] %s279_s2 }
  0x29   : > { %s300_s12 = scalar_lea.hbm %s1784_s1, %s1064_s15  ;;  %s293_s25 = scalar_lea.vmem [#allocation9], %s1003_s14 }
  0x2a   : > { %s303_s8 = sshll.u32 %s293_s25, 4  ;;  %s301_s18 = sshll.u32 %s300_s12, 4  ;;  %s302_s18 = int_to_ptr.hbm [resolvable:$true] %s301_s18  ;;  %s304_s8 = int_to_ptr.vmem [resolvable:$true] %s303_s8 }
  0x2b   : > { %s266_s23 = scalar_lea.sflag [#allocation7], %s265_s13  ;;  %s1812_s30 = smov 4  }
  0x2c   : > { %s1813_s19 = smov 64   ;;  %s289_s17 = sand.u32 1, %s1416_s26  }
  0x2d   : > { %1105 = dma.hbm_to_vmem [thread:$0]  (!%p1103_p2), %s278_s16, 128, %s280_s2, %s266_s23, %s1813_s19, %s1813_s19, %s1812_s30  }
  0x2e   : > { %s290_s20 = scalar_lea.sflag [#allocation10], %s289_s17  ;;  %315 = sbr.rel (%p1517_p8) target bundleno = 917 (0x395), region = 44 }
  0x2f   : > { %1108 = dma.hbm_to_vmem [thread:$0]  (!%p1103_p2), %s302_s18, 128, %s304_s8, %s290_s20, %s1813_s19, %s1813_s19, %s1812_s30  }
  0x30   : > { %s1577_s4 = sand.u32 (!%p1517_p8), 1, %s1400_s22  }
  0x31   : > { %s1010_s25 = sshll.u32 (!%p1517_p8), %s1577_s4, 3  ;;  %s318_s7 = scalar_lea.sflag (!%p1517_p8), [#allocation7], %s1577_s4 }
  0x32   : > { %s1581_s2 = scalar_lea.vmem (!%p1517_p8), [#allocation6], %s1010_s25 }
  0x33   : > { %1375 = dma.done.wait (%p1504_p4), %s318_s7, 128  }
  0x34   : > { %1377 = vsyncadd (%p1504_p4), %s318_s7, 4294967168  ;;  %s327_s23 = sand.u32 1, %s1495_s27   ;;  %s331_s10 = scalar_lea.vmem [#allocation9], %s1010_s25 }
  0x35   : > { %s328_s30 = scalar_lea.sflag [#allocation10], %s327_s23 }
  0x36   : > { %1379 = dma.done.wait (%p1504_p4), %s328_s30, 128  }
  0x37   : > { %1381 = vsyncadd (%p1504_p4), %s328_s30, 4294967168 }
  0x38   : > { %1383 = dma.done.wait (%p68_p1), [#allocation10], 256  }
  0x39   : > { %1385 = vsyncadd (%p68_p1), [#allocation10], 4294967040 }
  0x3a   : > { %1387 = dma.done.wait (%p68_p1), [#allocation13], 512  }
  0x3b   : > { %1389 = vsyncadd (%p68_p1), [#allocation13], 4294966784  ;;  %v1042_v0 = vld [vmem:[#allocation12 + $0x10] sm:$0xf]  ;;  %v1073_v1 = vld [vmem:[#allocation12 + $0x14] sm:$0xf0] }
  0x3c   : > { %v1072_v2 = vld [vmem:[#allocation12 + $0x14] sm:$0xf]  ;;  %v1043_v3 = vor.u32 %v1073_v1, %v1042_v0  ;;  %v1044_v4 = vld [vmem:[#allocation12 + $0x18] sm:$0xf0]  ;;  %v1034_v5 = vld [vmem:[#allocation12] sm:$0xf] }
  0x3d   : > { %v1071_v6 = vld [vmem:[#allocation12 + $0x4] sm:$0xf0]  ;;  %v1047_v7 = vor.u32 %v1072_v2, %v1044_v4  ;;  %v1070_v8 = vld [vmem:[#allocation12 + $0x4] sm:$0xf]  ;;  %v1036_v9 = vld [vmem:[#allocation12 + $0x8] sm:$0xf0] }
  0x3e   : > { %487 = vmatpush.bf16.msra.mxu1 %v1043_v3  ;;  %v1035_v10 = vor.u32 %v1071_v6, %v1034_v5  ;;  %v1068_v11 = vld [vmem:[#allocation11 + $0x8] sm:$0xff]  ;;  %v1039_v12 = vor.u32 %v1070_v8, %v1036_v9  ;;  %v1067_v13 = vld [vmem:[#allocation11] sm:$0xff]  ;;  %v1069_v14 = vld [vmem:[%s331_s10] sm:$0xff]  ;;  %vm411_vm0 = vcmask 261120   ;;  %s1014_s13 = sshll.u32 %s1577_s4, 4  ;;  %s1075_s15 = sshll.u32 %s1408_s24, 4 }
  0x3f   : > { %501 = vmatpush.bf16.msra.mxu2 %v1047_v7  ;;  %421 = vmatpush.bf16.msra.mxu0 %v1068_v11  ;;  %v1066_v15 = vld [vmem:[%s1581_s2] sm:$0xff]  ;;  %v446_v16 = vld [vmem:[%s1788_s5] sm:$0x3]  ;;  %s375_s14 = scalar_lea.vmem [#allocation14], %s1014_s13  ;;  %s858_s12 = scalar_lea.hbm %s1789_s6, %s1075_s15 }
  0x40   : > { %v448_v17 = vperm.slane %v446_v16, 0  ;;  %v449_v21 = vperm.slane %v446_v16, 1  ;;  %s859_s8 = sshll.u32 %s375_s14, 4  ;;  %s861_s19 = sshll.u32 %s858_s12, 4  ;;  %s860_s8 = int_to_ptr.vmem [resolvable:$true] %s859_s8  ;;  %s862_s19 = int_to_ptr.hbm [resolvable:$true] %s861_s19 }
  0x41   : > { %s845_s17 = scalar_lea.sflag [#allocation8], %s1577_s4  ;;  %s1336_s20 = sshra.s32 %s862_s19, 4  ;;  %s1337_s20 = int_to_ptr.hbm [resolvable:$true] %s1336_s20 }
  0x42   : > { %488 = vmatpush.bf16.msra.mxu1 %v1035_v10  ;;  %s1338_s24 = scalar_lea.hbm %s1337_s20, 16  ;;  %s1342_s2 = scalar_lea.hbm %s1789_s6, 32 }
  0x43   : > { %502 = vmatpush.bf16.msra.mxu2 %v1039_v12  ;;  %422 = vmatpush.bf16.msra.mxu0 %v1067_v13  ;;  %p1339_p1 = scmp.ne.s32.totalorder %s1337_s20, %s1338_s24  ;;  %p1343_p10 = scmp.lt.s32.totalorder %s1337_s20, %s1789_s6 }
  0x44   : > { %p1344_p12 = scmp.lt.s32.totalorder %s1342_s2, %s1338_s24 }
  0x45   : > { %1048 = vmatmul.msk.bf16.vlgmr.msra.gmra.mxu1 %vm411_vm0, %v1069_v14  ;;  %p1340_p4 = pnand %p1339_p1, %p1546_p7 }
  0x46   : > { %1049 = vmatmul.msk.bf16.vlgmr.msra.gmra.mxu2 %vm411_vm0, %v1069_v14  ;;  %1027 = vmatmul.msk.bf16.vlgmr.msra.gmra.mxu0 %vm411_vm0, %v1066_v15  ;;  %p1345_p13 = por %p1344_p12, %p1343_p10 }
  0x47   : > { %p1341_p8 = pneg %p1340_p4 }
  0x49   : > { %p1346_p0 = pnand %p1345_p13, %p1341_p8 }
  0xc2   : > { %v490_v18 = vpop.f32.mrf.mxu1 }
  0xc3   : > { %v1604_v19 = vadd.f32 %v490_v18, %v448_v17  ;;  %v424_v10 = vpop.f32.mrf.mxu0 }
  0xc5   : > { %v1607_v20 = vmul.f32 0.70710677, %v1604_v19 }
  0xc7   : > { %v517_v22 = vmul.f32 %v1607_v20, %v1607_v20 }
  0xc9   : > { %v1611_v23 = vmin.f32 %v517_v22, 16.0  ;;  %v504_v24 = vpop.f32.mrf.mxu2 }
  0xca   : > { %v1613_v25 = vadd.f32 %v504_v24, %v449_v21  ;;  %v492_v26 = vpop.f32.mrf.mxu1 }
  0xcb   : > { %v530_v27 = vmul.f32 3.8918573e-05, %v1611_v23  ;;  %v1616_v28 = vadd.f32 %v492_v26, %v448_v17  ;;  %v519_v38 = vmul.f32 2.1237322e-06, %v1611_v23 }
  0xcc   : > { %v1619_v29 = vmul.f32 0.70710677, %v1613_v25 }
  0xcd   : > { %v531_v30 = vadd.f32 0.001143296, %v530_v27  ;;  %v1624_v32 = vmul.f32 0.70710677, %v1616_v28  ;;  %v520_v47 = vadd.f32 0.00028619796, %v519_v38 }
  0xce   : > { %v557_v31 = vmul.f32 %v1619_v29, %v1619_v29  ;;  %v1181_v38 = vld [vmem:[%s1786_s3] ss:$0 sm:$0xff] }
  0xcf   : > { %v532_v33 = vmul.f32 %v531_v30, %v1611_v23  ;;  %v597_v35 = vmul.f32 %v1624_v32, %v1624_v32  ;;  %v521_v58 = vmul.f32 %v520_v47, %v1611_v23 }
  0xd0   : > { %v1627_v34 = vmin.f32 %v557_v31, 16.0 }
  0xd1   : > { %v533_v36 = vadd.f32 0.014752088, %v532_v33  ;;  %v506_v37 = vpop.f32.mrf.mxu2  ;;  %v1633_v40 = vmin.f32 %v597_v35, 16.0  ;;  %v522_v4 = vadd.f32 0.0036580483, %v521_v58 }
  0xd2   : > { %v570_v39 = vmul.f32 3.8918573e-05, %v1627_v34  ;;  %v559_v42 = vmul.f32 2.1237322e-06, %v1627_v34  ;;  %v1637_v43 = vadd.f32 %v506_v37, %v449_v21 }
  0xd3   : > { %v534_v41 = vmul.f32 %v533_v36, %v1611_v23  ;;  %v610_v46 = vmul.f32 3.8918573e-05, %v1633_v40  ;;  %v599_v55 = vmul.f32 2.1237322e-06, %v1633_v40  ;;  %v523_v13 = vmul.f32 %v522_v4, %v1611_v23 }
  0xd4   : > { %v571_v44 = vadd.f32 0.001143296, %v570_v39  ;;  %v560_v50 = vadd.f32 0.00028619796, %v559_v42  ;;  %v1643_v52 = vmul.f32 0.70710677, %v1637_v43  ;;  %v426_v39 = vpop.f32.mrf.mxu0 }
  0xd5   : > { %v535_v45 = vadd.f32 0.112945676, %v534_v41  ;;  %v611_v51 = vadd.f32 0.001143296, %v610_v46  ;;  %v600_v2 = vadd.f32 0.00028619796, %v599_v55 }
  0xd6   : > { %v572_v48 = vmul.f32 %v571_v44, %v1627_v34  ;;  %v637_v57 = vmul.f32 %v1643_v52, %v1643_v52  ;;  %v561_v61 = vmul.f32 %v560_v50, %v1627_v34  ;;  %v524_v30 = vadd.f32 0.05243302, %v523_v13 }
  0xd7   : > { %v536_v49 = vmul.f32 %v535_v45, %v1611_v23  ;;  %v612_v56 = vmul.f32 %v611_v51, %v1633_v40  ;;  %v601_v11 = vmul.f32 %v600_v2, %v1633_v40 }
  0xd8   : > { %v573_v53 = vadd.f32 0.014752088, %v572_v48  ;;  %v1653_v63 = vmin.f32 %v637_v57, 16.0  ;;  %v562_v7 = vadd.f32 0.0036580483, %v561_v61  ;;  %v525_v42 = vmul.f32 %v524_v30, %v1611_v23 }
  0xd9   : > { %v537_v54 = vadd.f32 0.4994258, %v536_v49  ;;  %v613_v62 = vadd.f32 0.014752088, %v612_v56  ;;  %v602_v24 = vadd.f32 0.0036580483, %v601_v11  ;;  %v425_v48 = vadd.f32 %v1181_v38, %v424_v10 }
  0xda   : > { %v574_v59 = vmul.f32 %v573_v53, %v1627_v34  ;;  %v639_v6 = vmul.f32 2.1237322e-06, %v1653_v63  ;;  %v650_v8 = vmul.f32 3.8918573e-05, %v1653_v63  ;;  %v563_v16 = vmul.f32 %v562_v7, %v1627_v34 }
  0xdb   : > { %v538_v60 = vmul.f32 %v537_v54, %v1611_v23  ;;  %v614_v3 = vmul.f32 %v613_v62, %v1633_v40  ;;  %v603_v41 = vmul.f32 %v602_v24, %v1633_v40  ;;  %v427_v49 = vadd.f32 %v1181_v38, %v426_v39 }
  0xdc   : > { %v575_v0 = vadd.f32 0.112945676, %v574_v59  ;;  %v640_v15 = vadd.f32 0.00028619796, %v639_v6  ;;  %v651_v18 = vadd.f32 0.001143296, %v650_v8 }
  0xdd   : > { %v1655_v1 = vadd.f32 1.0, %v538_v60  ;;  %v615_v12 = vadd.f32 0.112945676, %v614_v3  ;;  %v564_v33 = vadd.f32 0.05243302, %v563_v16  ;;  %v1079_v58 = vpack.c.bf16 %v427_v49, %v425_v48 }
  0xde   : > { %v576_v5 = vmul.f32 %v575_v0, %v1627_v34  ;;  %v652_v27 = vmul.f32 %v651_v18, %v1653_v63  ;;  %v641_v31 = vmul.f32 %v640_v15, %v1653_v63  ;;  %v604_v54 = vadd.f32 0.05243302, %v603_v41 }
  0xdf   : > { %1182 = vrcp.f32 %v1655_v1  ;;  %v616_v17 = vmul.f32 %v615_v12, %v1633_v40  ;;  %v565_v47 = vmul.f32 %v564_v33, %v1627_v34  ;;  %v526_v55 = vadd.f32 0.18741608, %v525_v42  ;;  %1080 = vst [vmem:[#allocation2] sm:$0xff] %v1079_v58  }
  0xe0   : > { %v577_v9 = vadd.f32 0.4994258, %v576_v5  ;;  %v653_v37 = vadd.f32 0.014752088, %v652_v27  ;;  %v642_v45 = vadd.f32 0.0036580483, %v641_v31  ;;  %v605_v2 = vmul.f32 %v604_v54, %v1633_v40 }
  0xe1   : > { %v617_v26 = vadd.f32 0.4994258, %v616_v17  ;;  %v566_v59 = vadd.f32 0.18741608, %v565_v47  ;;  %v527_v4 = vmul.f32 %v526_v55, %v1611_v23  ;;  %v551_v5 = vand.u32 2147483648, %v1655_v1 }
  0xe2   : > { %v578_v14 = vmul.f32 %v577_v9, %v1627_v34  ;;  %v654_v46 = vmul.f32 %v653_v37, %v1653_v63  ;;  %v643_v56 = vmul.f32 %v642_v45, %v1653_v63  ;;  %vm545_vm4 = vweird.f32 %v1655_v1 }
  0xe3   : > { %v618_v36 = vmul.f32 %v617_v26, %v1633_v40  ;;  %v567_v8 = vmul.f32 %v566_v59, %v1627_v34  ;;  %v549_v34 = vand.u32 2147483647, %v1655_v1  ;;  %v528_v24 = vadd.f32 1.1283791, %v527_v4 }
  0xe4   : > { %v1667_v21 = vadd.f32 1.0, %v578_v14  ;;  %v655_v57 = vadd.f32 0.112945676, %v654_v46  ;;  %v644_v6 = vadd.f32 0.05243302, %v643_v56  ;;  %v552_v31 = vor.u32 1.1754944e-38, %v551_v5 }
  0xe5   : > { %v1669_v22 = vpop.eup %1182  ;;  %v1682_v44 = vadd.f32 1.0, %v618_v36  ;;  %v606_v14 = vadd.f32 0.18741608, %v605_v2  ;;  %v568_v27 = vadd.f32 1.1283791, %v567_v8  ;;  %vm550_vm9 = vcmp.eq.f32.partialorder %v549_v34, 8.507059e+37 }
  0xe6   : > { %1184 = vrcp.f32 %v1667_v21  ;;  %v541_v35 = vmul.f32 %v1669_v22, %v1655_v1  ;;  %v656_v62 = vmul.f32 %v655_v57, %v1653_v63  ;;  %vm546_vm2 = vweird.f32 %v1669_v22 }
  0xe7   : > { %1186 = vrcp.f32 %v1682_v44  ;;  %v591_v12 = vand.u32 2147483648, %v1667_v21  ;;  %vm585_vm3 = vweird.f32 %v1667_v21  ;;  %v589_v23 = vand.u32 2147483647, %v1667_v21  ;;  %vm1709_vm6 = vmor %vm545_vm4, %vm546_vm2 }
  0xe8   : > { %v542_v51 = vsub.f32 1.0, %v541_v35  ;;  %v657_v7 = vadd.f32 0.4994258, %v656_v62  ;;  %v645_v17 = vmul.f32 %v644_v6, %v1653_v63  ;;  %v607_v35 = vmul.f32 %v606_v14, %v1633_v40 }
  0xe9   : > { %v592_v33 = vor.u32 1.1754944e-38, %v591_v12  ;;  %vm590_vm7 = vcmp.eq.f32.partialorder %v589_v23, 8.507059e+37  ;;  %v631_v38 = vand.u32 2147483648, %v1682_v44  ;;  %v569_v42 = vmul.f32 %v568_v27, %v1619_v29 }
  0xea   : > { %v543_v61 = vmul.f32 %v1669_v22, %v542_v51  ;;  %v658_v13 = vmul.f32 %v657_v7, %v1653_v63  ;;  %v646_v39 = vadd.f32 0.18741608, %v645_v17  ;;  %vm625_vm10 = vweird.f32 %v1682_v44 }
  0xeb   : > { %v529_v45 = vmul.f32 %v528_v24, %v1607_v20  ;;  %v608_v47 = vadd.f32 1.1283791, %v607_v35  ;;  %v509_v6 = vmul.f32 0.5, %v1604_v19  ;;  %v511_v12 = vmul.f32 0.5, %v1616_v28 }
  0xec   : > { %v1185_v50 = vpop.eup %1184  ;;  %v544_v11 = vadd.f32 %v1669_v22, %v543_v61  ;;  %v659_v18 = vadd.f32 1.0, %v658_v13  ;;  %v647_v51 = vmul.f32 %v646_v39, %v1653_v63  ;;  %v510_v63 = vmul.f32 0.5, %v1613_v25 }
  0xed   : > { %v581_v53 = vmul.f32 %v1185_v50, %v1667_v21  ;;  %v1187_v3 = vpop.eup %1186  ;;  %vm586_vm1 = vweird.f32 %v1185_v50  ;;  %v609_v29 = vmul.f32 %v608_v47, %v1624_v32  ;;  %v512_v13 = vmul.f32 0.5, %v1637_v43 }
  0xee   : > { %v621_v10 = vmul.f32 %v1187_v3, %v1682_v44  ;;  %vm1704_vm5 = vmor %vm585_vm3, %vm586_vm1  ;;  %v548_v1 = vsel %vm1709_vm6, %v1669_v22, %v544_v11  ;;  %1188 = vrcp.f32 %v659_v18  ;;  %vm626_vm8 = vweird.f32 %v1187_v3 }
  0xef   : > { %v582_v60 = vsub.f32 1.0, %v581_v53  ;;  %v553_v41 = vsel %vm550_vm9, %v552_v31, %v548_v1  ;;  %v629_v22 = vand.u32 2147483647, %v1682_v44  ;;  %vm627_vm11 = vmor %vm625_vm10, %vm626_vm8  ;;  %v648_v44 = vadd.f32 1.1283791, %v647_v51 }
  0xf0   : > { %v622_v15 = vsub.f32 1.0, %v621_v10  ;;  %v554_v49 = vmul.f32 %v553_v41, %v529_v45  ;;  %v671_v58 = vand.u32 2147483648, %v659_v18  ;;  %vm665_vm14 = vweird.f32 %v659_v18 }
  0xf1   : > { %v583_v0 = vmul.f32 %v1185_v50, %v582_v60  ;;  %vm630_vm12 = vcmp.eq.f32.partialorder %v629_v22, 8.507059e+37  ;;  %v669_v60 = vand.u32 2147483647, %v659_v18  ;;  %v649_v4 = vmul.f32 %v648_v44, %v1643_v52 }
  0xf2   : > { %v623_v30 = vmul.f32 %v1187_v3, %v622_v15  ;;  %v1050_v57 = vclamps-f32 %v554_v49, 1.0  ;;  %v672_v2 = vor.u32 1.1754944e-38, %v671_v58  ;;  %vm433_vm1 = vcmask 7168  }
  0xf3   : > { %v584_v9 = vadd.f32 %v1185_v50, %v583_v0  ;;  %vm670_vm0 = vcmp.eq.f32.partialorder %v669_v60, 8.507059e+37  ;;  %v1424_v28 = vmov -inf   ;;  %v718_v43 = vlaneseq }
  0xf4   : > { %v624_v36 = vadd.f32 %v1187_v3, %v623_v30  ;;  %v1189_v48 = vpop.eup %1188  ;;  %v677_v0 = vadd.f32 1.0, %v1050_v57  ;;  %434 = vst.msk [vmem:[#allocation3] sm:$0xff] %vm433_vm1, %v1424_v28  ;;  %vm727_vm3 = vcmask 130048   ;;  %v1426_v39 = vmov 0.0  }
  0xf5   : > { %v588_v21 = vsel %vm1704_vm5, %v1185_v50, %v584_v9  ;;  %v632_v50 = vor.u32 1.1754944e-38, %v631_v38  ;;  %v661_v53 = vmul.f32 %v1189_v48, %v659_v18  ;;  %vm666_vm13 = vweird.f32 %v1189_v48  ;;  %435 = vst.msk [vmem:[#allocation3 + $0x8] sm:$0xff] %vm433_vm1, %v1424_v28 }
  0xf6   : > { %v593_v37 = vsel %vm590_vm7, %v592_v33, %v588_v21  ;;  %v628_v40 = vsel %vm627_vm11, %v1187_v3, %v624_v36  ;;  %vm667_vm15 = vmor %vm665_vm14, %vm666_vm13  ;;  %v681_v9 = vmul.f32 %v677_v0, %v509_v6  ;;  %v1074_v21 = vld [vmem:[#allocation2] sm:$0xff]  ;;  %v719_v30 = vand.u32 127, %v718_v43  ;;  %436 = vst.msk [vmem:[#allocation4] sm:$0xff] %vm433_vm1, %v1426_v39 }
  0xf7   : > { %v594_v46 = vmul.f32 %v593_v37, %v569_v42  ;;  %v633_v54 = vsel %vm630_vm12, %v632_v50, %v628_v40  ;;  %v662_v56 = vsub.f32 1.0, %v661_v53  ;;  %v1425_v38 = vmov 0   ;;  %437 = vst.msk [vmem:[#allocation4 + $0x8] sm:$0xff] %vm433_vm1, %v1426_v39 }
  0xf8   : > { %v634_v20 = vmul.f32 %v633_v54, %v609_v29  ;;  %vm722_vm2 = vcmp.lt.s32.totalorder %v719_v30, 8  ;;  %1178 = vset.pattern.permute.xlu1 %v1425_v38  ;;  %1179 = vset.pattern.permute.xlu0 %v1425_v38 }
  0xf9   : > { %v1051_v55 = vclamps-f32 %v594_v46, 1.0  ;;  %v663_v59 = vmul.f32 %v1189_v48, %v662_v56  ;;  %1180 = vset.pattern.permute.xlu2 %v1425_v38 }
  0xfa   : > { %v1052_v3 = vclamps-f32 %v634_v20, 1.0 }
  0xfb   : > { %v678_v61 = vadd.f32 1.0, %v1051_v55  ;;  %v664_v62 = vadd.f32 %v1189_v48, %v663_v59  ;;  %v725_v41 = vld [vmem:[#allocation3] sm:$0xff] }
  0xfc   : > { %v679_v10 = vadd.f32 1.0, %v1052_v3  ;;  %v726_v47 = vld [vmem:[#allocation3 + $0x8] sm:$0xff] }
  0xfd   : > { %v668_v32 = vsel %vm667_vm15, %v1189_v48, %v664_v62  ;;  %v682_v7 = vmul.f32 %v678_v61, %v510_v63  ;;  %v758_v3 = vld [vmem:[#allocation4] sm:$0xff] }
  0xfe   : > { %v673_v5 = vsel %vm670_vm0, %v672_v2, %v668_v32  ;;  %v683_v14 = vmul.f32 %v679_v10, %v511_v12  ;;  %v759_v6 = vld [vmem:[#allocation4 + $0x8] sm:$0xff] }
  0xff   : > { %v674_v8 = vmul.f32 %v673_v5, %v649_v4  ;;  %v685_v23 = vpack.c.bf16 %v682_v7, %v681_v9 }
 0x101   : > { %v1053_v11 = vclamps-f32 %v674_v8, 1.0  ;;  %v689_v52 = vrot.slane %v685_v23, 4  ;;  %v699_v16 = vunpack.c.l.b16 %v685_v23 }
 0x103   : > { %v680_v25 = vadd.f32 1.0, %v1053_v11  ;;  %v794_v19 = vunpack.c.l.b16 %v689_v52 }
 0x105   : > { %v684_v15 = vmul.f32 %v680_v25, %v512_v13 }
 0x107   : > { %v686_v34 = vpack.c.bf16 %v684_v15, %v683_v14 }
 0x109   : > { %v700_v17 = vunpack.c.l.b16 %v686_v34  ;;  %v690_v18 = vrot.slane %v686_v34, 4 }
 0x10b   : > { %v701_v24 = vpack.c.b16 %v700_v17, %v699_v16  ;;  %v795_v26 = vunpack.c.l.b16 %v690_v18 }
 0x10d   : > { %710 = vmatpush.bf16.xpose.msra.mxu3 %v701_v24  ;;  %v796_v27 = vpack.c.b16 %v795_v26, %v794_v19 }
 0x10f   : > { %808 = vmatpush.bf16.msrb.mxu0 %v796_v27 }
 0x114   : > { %711 = vmatmul.bf16.vlgmr.msra.gmra.mxu3 %v1074_v21 }
 0x197   : > { %v712_v1 = vpop.f32.mrf.mxu3 }
 0x198   : > { %v723_v31 = vsel %vm722_vm2, %v712_v1, -1e+30 }
 0x199   : > { %v728_v33 = vsel %vm727_vm3, %v723_v31, -inf }
 0x19a   : > { %729 = vmax.xlane.f32.xlu0 %v728_v33 }
 0x19f   : > { %v714_v35 = vpop.f32.mrf.mxu3 }
 0x1a0   : > { %v724_v36 = vsel %vm722_vm2, %v714_v35, -1e+30 }
 0x1a1   : > { %v731_v37 = vsel %vm727_vm3, %v724_v36, -inf }
 0x1a2   : > { %732 = vmax.xlane.f32.xlu0 %v731_v37 }
 0x20d   : > { %v730_v42 = vpop.xlane.xlu0 %729 }
 0x20e   : > { %v734_v22 = vmax.f32 %v725_v41, %v730_v42 }
 0x210   : > { %v736_v45 = vsub.f32 %v725_v41, %v734_v22  ;;  %819 = vst.msk [vmem:[#allocation3] sm:$0xff] %vm433_vm1, %v734_v22  ;;  %744 = vperm.xlu1 %1178, %v734_v22  }
 0x212   : > { %v738_v46 = vmul.f32 1.442695, %v736_v45 }
 0x214   : > { %1190 = vpow2.f32 %v738_v46 }
 0x215   : > { %v733_v40 = vpop.xlane.xlu0 %732 }
 0x216   : > { %v735_v48 = vmax.f32 %v726_v47, %v733_v40 }
 0x218   : > { %v737_v49 = vsub.f32 %v726_v47, %v735_v48  ;;  %820 = vst.msk [vmem:[#allocation3 + $0x8] sm:$0xff] %vm433_vm1, %v735_v48  ;;  %749 = vperm.xlu1 %1178, %v735_v48  }
 0x21a   : > { %v1191_v50 = vpop.eup %1190  ;;  %v740_v51 = vmul.f32 1.442695, %v737_v49 }
 0x21b   : > { %777 = vperm.xlu0 %1179, %v1191_v50   ;;  %v760_v4 = vmul.f32 %v1191_v50, %v758_v3 }
 0x21c   : > { %1192 = vpow2.f32 %v740_v51 }
 0x222   : > { %v1193_v53 = vpop.eup %1192 }
 0x223   : > { %782 = vperm.xlu1 %1178, %v1193_v53   ;;  %v761_v7 = vmul.f32 %v1193_v53, %v759_v6 }
 0x282   : > { %v745_v54 = vpop.permute.xlu1 %744 }
 0x283   : > { %v752_v55 = vsub.f32 %v723_v31, %v745_v54 }
 0x285   : > { %v754_v29 = vmul.f32 1.442695, %v752_v55 }
 0x287   : > { %1194 = vpow2.f32 %v754_v29 }
 0x28a   : > { %v750_v56 = vpop.permute.xlu1 %749 }
 0x28b   : > { %v753_v57 = vsub.f32 %v724_v36, %v750_v56 }
 0x28d   : > { %v1195_v44 = vpop.eup %1194  ;;  %v756_v58 = vmul.f32 1.442695, %v753_v57  ;;  %v778_v25 = vpop.permute.xlu0 %777 }
 0x28e   : > { %v762_v20 = vsel %vm727_vm3, %v1195_v44, 0.0  ;;  %v787_v59 = vpack.c.bf16 %v1195_v44, %v1195_v44  ;;  %v785_v14 = vmul.f32 0.0, %v778_v25 }
 0x28f   : > { %1196 = vpow2.f32 %v756_v58  ;;  %763 = vadd.xlane.f32.xlu2 %v762_v20 }
 0x290   : > { %v791_v0 = vunpack.c.l.b16 %v787_v59 }
 0x295   : > { %v1197_v60 = vpop.eup %1196  ;;  %v783_v16 = vpop.permute.xlu1 %782 }
 0x296   : > { %v788_v61 = vpack.c.bf16 %v1197_v60, %v1197_v60  ;;  %v765_v62 = vsel %vm727_vm3, %v1197_v60, 0.0  ;;  %v786_v18 = vmul.f32 0.0, %v783_v16 }
 0x297   : > { %766 = vadd.xlane.f32.xlu2 %v765_v62 }
 0x298   : > { %v792_v63 = vunpack.c.l.b16 %v788_v61 }
 0x29a   : > { %v793_v2 = vpack.c.b16 %v792_v63, %v791_v0 }
 0x29c   : > { %1058 = vmatmul.msk.bf16.vlgmr.msrb.gmra.mxu0 %vm727_vm3, %v793_v2 }
 0x302   : > { %v764_v32 = vpop.xlane.xlu2 %763 }
 0x303   : > { %v768_v5 = vadd.f32 %v764_v32, %v760_v4 }
 0x305   : > { %771 = vst.msk [vmem:[#allocation4] sm:$0xff] %vm433_vm1, %v768_v5 }
 0x30a   : > { %v767_v8 = vpop.xlane.xlu2 %766 }
 0x30b   : > { %v769_v9 = vadd.f32 %v767_v8, %v761_v7 }
 0x30c   : > { %v826_v10 = vld [vmem:[#allocation4] sm:$0xff] }
 0x30d   : > { %772 = vst.msk [vmem:[#allocation4 + $0x8] sm:$0xff] %vm433_vm1, %v769_v9  ;;  %1198 = vrcp.f32 %v826_v10 }
 0x313   : > { %v1199_v11 = vpop.eup %1198 }
 0x314   : > { %832 = vperm.xlu2 %1180, %v1199_v11   ;;  %v827_v12 = vld [vmem:[#allocation4 + $0x8] sm:$0xff] }
 0x315   : > { %1200 = vrcp.f32 %v827_v12 }
 0x319   : > { %v810_v23 = vpop.f32.mrf.mxu0 }
 0x31a   : > { %v815_v15 = vadd.f32 %v810_v23, %v785_v14 }
 0x31b   : > { %v1201_v13 = vpop.eup %1200 }
 0x31c   : > { %837 = vperm.xlu1 %1178, %v1201_v13  }
 0x321   : > { %v812_v17 = vpop.f32.mrf.mxu0 }
 0x322   : > { %v816_v24 = vadd.f32 %v812_v17, %v786_v18 }
 0x36e   : > { %v833_v34 = vpop.permute.xlu2 %832 }
 0x36f   : > { %v840_v52 = vmul.f32 %v833_v34, %v815_v15 }
 0x371   : > { %842 = vst [vmem:[%s375_s14] sm:$0xff] %v840_v52 }
 0x38e   : > { %v838_v19 = vpop.permute.xlu1 %837 }
 0x38f   : > { %v841_v26 = vmul.f32 %v838_v19, %v816_v24 }
 0x391   : > { %843 = vst [vmem:[%s375_s14 + $0x8] sm:$0xff] %v841_v26 }
 0x392   : > { %1349 = shalt.err (!%p1346_p0)
}
 0x393   : > { %s1427_s4 = smov 128   ;;  %s1428_s10 = smov 8  }
 0x394   : > { %1093 = dma.vmem_to_hbm [thread:$0]  (%p1546_p7), %s860_s8, 256, %s862_s19, %s845_s17, %s1427_s4, %s1427_s4, %s1428_s10  }
 0x395 PF: > { %s876_s29 = sand.u32 1, %s1396_s21   ;;  %p1110_p3 = pnand %p1002_p11, %p1509_p6 }
 0x396   : > { %s877_s16 = scalar_lea.sflag [#allocation8], %s876_s29 }
 0x397   : > { %p1111_p5 = pneg %p1110_p3 }
 0x399   : > { %1391 = dma.done.wait (%p1111_p5), %s877_s16, 256  }
 0x39a   : > { %1393 = vsyncadd (%p1111_p5), %s877_s16, 4294967040  ;;  %s26_s26 = sadd.s32 1, %s1416_s26   ;;  %s1819_s9 = sld [smem:[#allocation20_spill]] }
 0x39b   : > { %p23_p9 = scmp.ge.s32.totalorder %s26_s26, 4   ;;  %s1820_s23 = sld [smem:[#allocation24_spill]] }
 0x39c   : > { %s1821_s24 = sld [smem:[#allocation21_spill]]  ;;  %s1823_s21 = smov %s1400_s22 }
 0x39d   : > { %s1822_s25 = sld [smem:[#allocation23_spill]]  ;;  %25 = sbr.rel (!%p23_p9) target bundleno = 12 (0xc), region = 118 }
 0x3a0   : > { %s1824_s22 = smov %s1819_s9 }
 0x3a2   :  { %883 = vsyncpa [#allocation7], 1 }
 0x3a3   :  { %885 = vsyncpa [#allocation7 + $0x1], 1 }
 0x3a4   :  { %886 = vsyncpa [#allocation10], 1 }
 0x3a5   :  { %888 = vsyncpa [#allocation10 + $0x1], 1 }
 0x3a6   :  { %889 = vsyncpa [#allocation13], 1 }
 0x3a7   :  { %890 = vsyncpa [#allocation8], 1 }
 0x3a8   :  { %892 = vsyncpa [#allocation8 + $0x1], 1 }

</bundles_post_ra>
